<compile_context>
chip_gen: v7x
topology: tpu7x:2x2x1
jax: 0.10.0
libtpu: 0.0.40
codegen_flags: <defaults>
</compile_context>

<pallas_src>
import functools

import jax
import jax.numpy as jnp
from jax.experimental import pallas as pl
from jax.experimental.pallas import tpu as pltpu


def _round_up(x, m):
    return (x + m - 1) // m * m


def _lm_head_kernel(cls_ref, w1_ref, b1_ref, gamma_ref, beta_ref,
                    w2_ref, b2_ref, logits_ref, feat_ref):
    """One batch tile of: Linear(E->H) -> LayerNorm(H) -> Linear(H->C_pad)."""
    # Linear(E -> H) on the MXU. Operands stay in their native dtype (bf16 on
    # v6e/v7x halves HBM traffic for w1); accumulation is f32.
    h = jnp.dot(cls_ref[...], w1_ref[...], preferred_element_type=jnp.float32)
    h = h + b1_ref[...].astype(jnp.float32)

    # LayerNorm(H): eps = 1e-5, biased variance (matches torch.nn.LayerNorm).
    # Statistics kept in f32 on every generation (v5e has no bf16 VPU/EUP).
    mean = jnp.mean(h, axis=-1, keepdims=True)
    centered = h - mean
    var = jnp.mean(centered * centered, axis=-1, keepdims=True)
    feat_f32 = (centered * jax.lax.rsqrt(var + 1e-5)
                * gamma_ref[...].astype(jnp.float32)
                + beta_ref[...].astype(jnp.float32))
    feat_ref[...] = feat_f32.astype(feat_ref.dtype)

    # Classifier Linear(H -> C_pad). C is zero-padded to a full 128-lane width
    # in the wrapper, so this store is lane-dense (no masked vst).
    logits = jnp.dot(feat_f32.astype(w2_ref.dtype), w2_ref[...],
                     preferred_element_type=jnp.float32)
    logits_ref[...] = logits + b2_ref[...].astype(jnp.float32)


@functools.partial(jax.jit, static_argnames=("block_b", "feat_dtype"))
def iemocap_lm_head(cls_emb, w1, b1, gamma, beta, w2, b2,
                    *, block_b=None, feat_dtype=None):
    """cls_emb: (B, E) CLS embeddings. Returns (logits (B, C), features (B, H))."""
    B, E = cls_emb.shape
    E_w, H = w1.shape
    H_w, C = w2.shape
    assert E_w == E and H_w == H

    if feat_dtype is None:
        feat_dtype = cls_emb.dtype

    # Batch tile: whole batch in one grid step when possible; cap at 128 rows
    # (one full MXU pass on v5e, small fraction of VMEM on v6e/v7x). Pad the
    # batch so the grid divides evenly; padded rows are sliced off afterwards.
    if block_b is None:
        block_b = min(_round_up(B, 8), 128)
    B_pad = _round_up(B, block_b)
    x = cls_emb if B_pad == B else jnp.pad(cls_emb, ((0, B_pad - B), (0, 0)))

    # Lane-dense classifier output: pad C up to a multiple of 128.
    C_pad = _round_up(max(C, 128), 128)
    w2_p = jnp.zeros((H, C_pad), w2.dtype).at[:, :C].set(w2)
    b2_p = jnp.zeros((1, C_pad), b2.dtype).at[0, :C].set(b2)

    # Biases / LN params as (1, dim) rows for TPU layout.
    b1_2d = b1.reshape(1, H)
    gamma_2d = gamma.reshape(1, H)
    beta_2d = beta.reshape(1, H)

    grid = (B_pad // block_b,)
    full = lambda shape: pl.BlockSpec(shape, lambda i: (0, 0))

    logits_p, feat_p = pl.pallas_call(
        _lm_head_kernel,
        out_shape=(
            jax.ShapeDtypeStruct((B_pad, C_pad), jnp.float32),   # padded logits
            jax.ShapeDtypeStruct((B_pad, H), feat_dtype),        # features
        ),
        grid_spec=pltpu.PrefetchScalarGridSpec(
            num_scalar_prefetch=0,
            grid=grid,
            in_specs=[
                pl.BlockSpec((block_b, E), lambda i: (i, 0)),    # cls embeddings
                full((E, H)),                                    # w1
                full((1, H)),                                    # b1
                full((1, H)),                                    # gamma
                full((1, H)),                                    # beta
                full((H, C_pad)),                                # w2 (padded)
                full((1, C_pad)),                                # b2 (padded)
            ],
            out_specs=[
                pl.BlockSpec((block_b, C_pad), lambda i: (i, 0)),
                pl.BlockSpec((block_b, H), lambda i: (i, 0)),
            ],
        ),
        compiler_params=pltpu.CompilerParams(
            dimension_semantics=("parallel",)),   # batch axis shards across TCs on v7x
    )(x, w1, b1_2d, gamma_2d, beta_2d, w2_p, b2_p)

    return logits_p[:B, :C], feat_p[:B]


def _reference(cls_emb, w1, b1, gamma, beta, w2, b2):
    h = cls_emb @ w1 + b1
    mean = jnp.mean(h, axis=-1, keepdims=True)
    var = jnp.mean(jnp.square(h - mean), axis=-1, keepdims=True)
    feat = (h - mean) * jax.lax.rsqrt(var + 1e-5) * gamma + beta
    return feat @ w2 + b2, feat


if __name__ == "__main__":
    # Small shapes consistent with the module (real model: E=H=768, C=6, S<=128).
    B, S, E, H, C = 16, 8, 256, 128, 6

    key = jax.random.PRNGKey(0)
    k_x, k_w1, k_b1, k_w2, k_b2 = jax.random.split(key, 5)

    # Synthetic "last_hidden_state" standing in for the (untranslatable) BERT encoder.
    last_hidden_state = jax.random.normal(k_x, (B, S, E), dtype=jnp.float32)

    # Deterministic parameter init (shapes from the module's __init__).
    w1 = jax.random.normal(k_w1, (E, H), dtype=jnp.float32) * (E ** -0.5)
    b1 = jax.random.normal(k_b1, (H,), dtype=jnp.float32) * 0.02
    gamma = jnp.ones((H,), dtype=jnp.float32)     # LayerNorm weight init
    beta = jnp.zeros((H,), dtype=jnp.float32)     # LayerNorm bias init
    w2 = jax.random.normal(k_w2, (H, C), dtype=jnp.float32) * (H ** -0.5)
    b2 = jax.random.normal(k_b2, (C,), dtype=jnp.float32) * 0.02

    # Glue: CLS-token embedding, same as last_hidden_state[:, 0, :].
    cls_emb = last_hidden_state[:, 0, :]

    # f32 path: strict check against the JAX reference.
    logits, features = iemocap_lm_head(cls_emb, w1, b1, gamma, beta, w2, b2)
    jax.block_until_ready((logits, features))

    ref_logits, ref_features = _reference(cls_emb, w1, b1, gamma, beta, w2, b2)
    assert logits.shape == (B, C) and features.shape == (B, H)
    assert jnp.allclose(logits, ref_logits, atol=2e-4, rtol=2e-4)
    assert jnp.allclose(features, ref_features, atol=2e-4, rtol=2e-4)

    # bf16 operand path (native MXU dtype on v6e/v7x): LayerNorm math stays in
    # f32 inside the kernel; compare loosely against the f32 reference.
    bf16 = jnp.bfloat16
    logits_bf, feat_bf = iemocap_lm_head(
        cls_emb.astype(bf16), w1.astype(bf16), b1.astype(bf16),
        gamma.astype(bf16), beta.astype(bf16), w2.astype(bf16), b2.astype(bf16))
    jax.block_until_ready((logits_bf, feat_bf))
    assert feat_bf.dtype == bf16
    assert jnp.allclose(logits_bf, ref_logits, atol=1e-1, rtol=1e-1)
    assert jnp.allclose(feat_bf.astype(jnp.float32), ref_features,
                        atol=1e-1, rtol=1e-1)

    print("KERNEL_OK")
</pallas_src>

<mosaic_0001>
module attributes {stable_mosaic.version = 11 : i64} {
  func.func @_lm_head_kernel(%arg0: i32, %arg1: memref<16x256xf32, #tpu.memory_space<vmem>>, %arg2: memref<256x128xf32, #tpu.memory_space<vmem>>, %arg3: memref<1x128xf32, #tpu.memory_space<vmem>>, %arg4: memref<1x128xf32, #tpu.memory_space<vmem>>, %arg5: memref<1x128xf32, #tpu.memory_space<vmem>>, %arg6: memref<128x128xf32, #tpu.memory_space<vmem>>, %arg7: memref<1x128xf32, #tpu.memory_space<vmem>>, %arg8: memref<16x128xf32, #tpu.memory_space<vmem>>, %arg9: memref<16x128xf32, #tpu.memory_space<vmem>>) attributes {dimension_semantics = [#tpu.dimension_semantics<parallel>], iteration_bounds = array<i64: 1>, scalar_prefetch = 0 : i64, scratch_operands = 0 : i64, tpu.core_type = #tpu.core_type<tc>, window_params = [{transform_indices = @transform_0, window_bounds = array<i64: 16, 256>}, {pipeline_mode = #tpu.pipeline_mode<synchronous>, transform_indices = @transform_1, window_bounds = array<i64: 256, 128>}, {pipeline_mode = #tpu.pipeline_mode<synchronous>, transform_indices = @transform_2, window_bounds = array<i64: 1, 128>}, {pipeline_mode = #tpu.pipeline_mode<synchronous>, transform_indices = @transform_3, window_bounds = array<i64: 1, 128>}, {pipeline_mode = #tpu.pipeline_mode<synchronous>, transform_indices = @transform_4, window_bounds = array<i64: 1, 128>}, {pipeline_mode = #tpu.pipeline_mode<synchronous>, transform_indices = @transform_5, window_bounds = array<i64: 128, 128>}, {pipeline_mode = #tpu.pipeline_mode<synchronous>, transform_indices = @transform_6, window_bounds = array<i64: 1, 128>}, {transform_indices = @transform_7, window_bounds = array<i64: 16, 128>}, {transform_indices = @transform_8, window_bounds = array<i64: 16, 128>}]} {
    %c0 = arith.constant 0 : index
    %c0_0 = arith.constant 0 : index
    %0 = vector.load %arg1[%c0, %c0_0] : memref<16x256xf32, #tpu.memory_space<vmem>>, vector<16x256xf32>
    %c0_1 = arith.constant 0 : index
    %c0_2 = arith.constant 0 : index
    %1 = vector.load %arg2[%c0_1, %c0_2] : memref<256x128xf32, #tpu.memory_space<vmem>>, vector<256x128xf32>
    %cst = arith.constant dense<0.000000e+00> : vector<16x128xf32>
    %2 = tpu.matmul %0, %1, %cst {dimension_numbers = #tpu.dot_dimension_numbers<[1], [0], [0], [1], [0, 0, 1, 1], [], []>} : vector<16x256xf32>, vector<256x128xf32>, vector<16x128xf32> -> vector<16x128xf32>
    %c0_3 = arith.constant 0 : index
    %c0_4 = arith.constant 0 : index
    %3 = vector.load %arg3[%c0_3, %c0_4] : memref<1x128xf32, #tpu.memory_space<vmem>>, vector<1x128xf32>
    %4 = vector.broadcast %3 : vector<1x128xf32> to vector<16x128xf32>
    %5 = arith.addf %2, %4 : vector<16x128xf32>
    %cst_5 = arith.constant dense<0.000000e+00> : vector<16xf32>
    %6 = vector.multi_reduction <add>, %5, %cst_5 [1] : vector<16x128xf32> to vector<16xf32>
    %7 = vector.shape_cast %6 : vector<16xf32> to vector<16x1xf32>
    %cst_6 = arith.constant 1.280000e+02 : f32
    %8 = vector.broadcast %cst_6 : f32 to vector<16x1xf32>
    %9 = arith.divf %7, %8 : vector<16x1xf32>
    %10 = vector.broadcast %9 : vector<16x1xf32> to vector<16x128xf32>
    %11 = arith.subf %5, %10 : vector<16x128xf32>
    %12 = arith.mulf %11, %11 : vector<16x128xf32>
    %cst_7 = arith.constant dense<0.000000e+00> : vector<16xf32>
    %13 = vector.multi_reduction <add>, %12, %cst_7 [1] : vector<16x128xf32> to vector<16xf32>
    %14 = vector.shape_cast %13 : vector<16xf32> to vector<16x1xf32>
    %cst_8 = arith.constant 1.280000e+02 : f32
    %15 = vector.broadcast %cst_8 : f32 to vector<16x1xf32>
    %16 = arith.divf %14, %15 : vector<16x1xf32>
    %cst_9 = arith.constant 9.99999974E-6 : f32
    %17 = vector.broadcast %cst_9 : f32 to vector<16x1xf32>
    %18 = arith.addf %16, %17 : vector<16x1xf32>
    %19 = math.rsqrt %18 : vector<16x1xf32>
    %20 = vector.broadcast %19 : vector<16x1xf32> to vector<16x128xf32>
    %21 = arith.mulf %11, %20 : vector<16x128xf32>
    %c0_10 = arith.constant 0 : index
    %c0_11 = arith.constant 0 : index
    %22 = vector.load %arg4[%c0_10, %c0_11] : memref<1x128xf32, #tpu.memory_space<vmem>>, vector<1x128xf32>
    %23 = vector.broadcast %22 : vector<1x128xf32> to vector<16x128xf32>
    %24 = arith.mulf %21, %23 : vector<16x128xf32>
    %c0_12 = arith.constant 0 : index
    %c0_13 = arith.constant 0 : index
    %25 = vector.load %arg5[%c0_12, %c0_13] : memref<1x128xf32, #tpu.memory_space<vmem>>, vector<1x128xf32>
    %26 = vector.broadcast %25 : vector<1x128xf32> to vector<16x128xf32>
    %27 = arith.addf %24, %26 : vector<16x128xf32>
    %c0_14 = arith.constant 0 : index
    %c0_15 = arith.constant 0 : index
    %28 = vector.load %arg9[%c0_14, %c0_15] : memref<16x128xf32, #tpu.memory_space<vmem>>, vector<16x128xf32>
    tpu.vector_store %arg9[%c0_14, %c0_15], %27 {strides = array<i32>} : memref<16x128xf32, #tpu.memory_space<vmem>>, vector<16x128xf32>,
    %c0_16 = arith.constant 0 : index
    %c0_17 = arith.constant 0 : index
    %29 = vector.load %arg6[%c0_16, %c0_17] : memref<128x128xf32, #tpu.memory_space<vmem>>, vector<128x128xf32>
    %cst_18 = arith.constant dense<0.000000e+00> : vector<16x128xf32>
    %30 = tpu.matmul %27, %29, %cst_18 {dimension_numbers = #tpu.dot_dimension_numbers<[1], [0], [0], [1], [0, 0, 1, 1], [], []>} : vector<16x128xf32>, vector<128x128xf32>, vector<16x128xf32> -> vector<16x128xf32>
    %c0_19 = arith.constant 0 : index
    %c0_20 = arith.constant 0 : index
    %31 = vector.load %arg7[%c0_19, %c0_20] : memref<1x128xf32, #tpu.memory_space<vmem>>, vector<1x128xf32>
    %32 = vector.broadcast %31 : vector<1x128xf32> to vector<16x128xf32>
    %33 = arith.addf %30, %32 : vector<16x128xf32>
    %c0_21 = arith.constant 0 : index
    %c0_22 = arith.constant 0 : index
    %34 = vector.load %arg8[%c0_21, %c0_22] : memref<16x128xf32, #tpu.memory_space<vmem>>, vector<16x128xf32>
    tpu.vector_store %arg8[%c0_21, %c0_22], %33 {strides = array<i32>} : memref<16x128xf32, #tpu.memory_space<vmem>>, vector<16x128xf32>,
    return
  }
  func.func @transform_0(%arg0: i32) -> (i32, i32) {
    %c0_i32 = arith.constant 0 : i32
    %c0_i32_0 = arith.constant 0 : i32
    return %arg0, %c0_i32 : i32, i32
  }
  func.func @transform_1(%arg0: i32) -> (i32, i32) {
    %c0_i32 = arith.constant 0 : i32
    %c0_i32_0 = arith.constant 0 : i32
    %c0_i32_1 = arith.constant 0 : i32
    return %c0_i32, %c0_i32_0 : i32, i32
  }
  func.func @transform_2(%arg0: i32) -> (i32, i32) {
    %c0_i32 = arith.constant 0 : i32
    %c0_i32_0 = arith.constant 0 : i32
    %c0_i32_1 = arith.constant 0 : i32
    return %c0_i32, %c0_i32_0 : i32, i32
  }
  func.func @transform_3(%arg0: i32) -> (i32, i32) {
    %c0_i32 = arith.constant 0 : i32
    %c0_i32_0 = arith.constant 0 : i32
    %c0_i32_1 = arith.constant 0 : i32
    return %c0_i32, %c0_i32_0 : i32, i32
  }
  func.func @transform_4(%arg0: i32) -> (i32, i32) {
    %c0_i32 = arith.constant 0 : i32
    %c0_i32_0 = arith.constant 0 : i32
    %c0_i32_1 = arith.constant 0 : i32
    return %c0_i32, %c0_i32_0 : i32, i32
  }
  func.func @transform_5(%arg0: i32) -> (i32, i32) {
    %c0_i32 = arith.constant 0 : i32
    %c0_i32_0 = arith.constant 0 : i32
    %c0_i32_1 = arith.constant 0 : i32
    return %c0_i32, %c0_i32_0 : i32, i32
  }
  func.func @transform_6(%arg0: i32) -> (i32, i32) {
    %c0_i32 = arith.constant 0 : i32
    %c0_i32_0 = arith.constant 0 : i32
    %c0_i32_1 = arith.constant 0 : i32
    return %c0_i32, %c0_i32_0 : i32, i32
  }
  func.func @transform_7(%arg0: i32) -> (i32, i32) {
    %c0_i32 = arith.constant 0 : i32
    %c0_i32_0 = arith.constant 0 : i32
    return %arg0, %c0_i32 : i32, i32
  }
  func.func @transform_8(%arg0: i32) -> (i32, i32) {
    %c0_i32 = arith.constant 0 : i32
    %c0_i32_0 = arith.constant 0 : i32
    return %arg0, %c0_i32 : i32, i32
  }
}

</mosaic_0001>

<bundles_post_ra>
// kernel: iemocap_lm_head.1
= control target key start
LH: loop header
LB: loop body
LE: loop exit
PB: predicated region body
PF: predicated region fallthrough
CT: control target
= control target key end

     0   :  { %s734_s0 = inlined_call_operand.vmem [shape: f32[16,256], index: 0, kind: input, shape index: {}]   ;;  %s735_s1 = inlined_call_operand.vmem [shape: f32[256,128], index: 1, kind: input, shape index: {}]   ;;  %s736_s2 = inlined_call_operand.vmem [shape: f32[1,128], index: 2, kind: input, shape index: {}]   ;;  %s737_s3 = inlined_call_operand.vmem [shape: f32[1,128], index: 3, kind: input, shape index: {}]   ;;  %s738_s4 = inlined_call_operand.vmem [shape: f32[1,128], index: 4, kind: input, shape index: {}]   ;;  %s739_s5 = inlined_call_operand.vmem [shape: f32[128,128], index: 5, kind: input, shape index: {}]   ;;  %s740_s6 = inlined_call_operand.vmem [shape: f32[1,128], index: 6, kind: input, shape index: {}]   ;;  %s741_s7 = inlined_call_operand.vmem [shape: f32[16,128], index: 7, kind: output, shape index: {0}]   ;;  %s742_s8 = inlined_call_operand.hbm [shape: f32[16,128], index: 8, kind: output, shape index: {1}]  }
   0x1   :  { %v49_v0 = vld [vmem:[%s735_s1 + $0x80] sm:$0xff]  ;;  %v50_v1 = vld [vmem:[%s735_s1 + $0x88] sm:$0xff]  ;;  %v51_v5 = vld [vmem:[%s735_s1 + $0x90] sm:$0xff] }
   0x2   :  { %v33_v2 = vld [vmem:[%s735_s1] sm:$0xff]  ;;  %v405_v3 = vpack.c.bf16 %v50_v1, %v49_v0  ;;  %v34_v4 = vld [vmem:[%s735_s1 + $0x8] sm:$0xff]  ;;  %v52_v6 = vld [vmem:[%s735_s1 + $0x98] sm:$0xff] }
   0x3   :  { %v407_v7 = vpack.c.bf16 %v34_v4, %v33_v2  ;;  %v409_v8 = vpack.c.bf16 %v52_v6, %v51_v5  ;;  %v35_v9 = vld [vmem:[%s735_s1 + $0x10] sm:$0xff]  ;;  %v36_v10 = vld [vmem:[%s735_s1 + $0x18] sm:$0xff]  ;;  %v53_v11 = vld [vmem:[%s735_s1 + $0xa0] sm:$0xff] }
   0x4   :  { %406 = vmatprep.subr.bf16.mxu0 %v405_v3  ;;  %v54_v12 = vld [vmem:[%s735_s1 + $0xa8] sm:$0xff]  ;;  %v411_v13 = vpack.c.bf16 %v36_v10, %v35_v9  ;;  %v37_v15 = vld [vmem:[%s735_s1 + $0x20] sm:$0xff]  ;;  %v55_v17 = vld [vmem:[%s735_s1 + $0xb0] sm:$0xff] }
   0x5   :  { %408 = vmatpush3.bf16.msra.mxu0 %v407_v7  ;;  %v413_v14 = vpack.c.bf16 %v54_v12, %v53_v11  ;;  %v38_v16 = vld [vmem:[%s735_s1 + $0x28] sm:$0xff]  ;;  %v56_v18 = vld [vmem:[%s735_s1 + $0xb8] sm:$0xff]  ;;  %v39_v21 = vld [vmem:[%s735_s1 + $0x30] sm:$0xff] }
   0x6   :  { %410 = vmatprep.subr.bf16.mxu0 %v409_v8  ;;  %v415_v19 = vpack.c.bf16 %v38_v16, %v37_v15  ;;  %v417_v20 = vpack.c.bf16 %v56_v18, %v55_v17  ;;  %v40_v22 = vld [vmem:[%s735_s1 + $0x38] sm:$0xff]  ;;  %v57_v23 = vld [vmem:[%s735_s1 + $0xc0] sm:$0xff]  ;;  %v58_v24 = vld [vmem:[%s735_s1 + $0xc8] sm:$0xff] }
   0x7   :  { %v30_v25 = vld [vmem:[%s734_s0 + $0x8] sm:$0xff]  ;;  %v419_v26 = vpack.c.bf16 %v40_v22, %v39_v21 }
   0x8   :  { %136 = vmatprep.mubr.f32.mxu0 %v30_v25 }
   0x9   :  { %412 = vmatpush3.bf16.msra.mxu0 %v411_v13 }
   0xa   :  { %414 = vmatprep.subr.bf16.mxu0 %v413_v14 }
   0xd   :  { %416 = vmatpush3.bf16.msra.mxu0 %v415_v19 }
   0xe   :  { %14 = vsyncpa [#allocation3], 0  ;;  %418 = vmatprep.subr.bf16.mxu0 %v417_v20  ;;  %v421_v27 = vpack.c.bf16 %v58_v24, %v57_v23  ;;  %v41_v28 = vld [vmem:[%s735_s1 + $0x40] sm:$0xff]  ;;  %v42_v29 = vld [vmem:[%s735_s1 + $0x48] sm:$0xff]  ;;  %s500_s20 = smov [#allocation2]  }
   0xf   :  { %v59_v30 = vld [vmem:[%s735_s1 + $0xd0] sm:$0xff]  ;;  %v60_v31 = vld [vmem:[%s735_s1 + $0xd8] sm:$0xff]  ;;  %v423_v32 = vpack.c.bf16 %v42_v29, %v41_v28  ;;  %v61_v36 = vld [vmem:[%s735_s1 + $0xe0] sm:$0xff]  ;;  %s297_s21 = sshll.u32 %s500_s20, 4  ;;  %s298_s21 = int_to_ptr.vmem [resolvable:$true] %s297_s21 }
  0x10   :  { %v425_v33 = vpack.c.bf16 %v60_v31, %v59_v30  ;;  %v43_v34 = vld [vmem:[%s735_s1 + $0x50] sm:$0xff]  ;;  %v44_v35 = vld [vmem:[%s735_s1 + $0x58] sm:$0xff]  ;;  %v62_v37 = vld [vmem:[%s735_s1 + $0xe8] sm:$0xff]  ;;  %s476_s22 = scalar_lea.vmem %s298_s21, 256  ;;  %p481_p1 = scmp.lt.s32.totalorder %s298_s21, %s298_s21 }
  0x11   :  { %420 = vmatpush3.bf16.msra.mxu0 %v419_v26  ;;  %v427_v38 = vpack.c.bf16 %v44_v35, %v43_v34  ;;  %v429_v39 = vpack.c.bf16 %v62_v37, %v61_v36  ;;  %v45_v40 = vld [vmem:[%s735_s1 + $0x60] sm:$0xff]  ;;  %v46_v41 = vld [vmem:[%s735_s1 + $0x68] sm:$0xff]  ;;  %v63_v42 = vld [vmem:[%s735_s1 + $0xf0] sm:$0xff]  ;;  %p477_p0 = scmp.ne.s32.totalorder %s298_s21, %s476_s22  ;;  %p482_p2 = scmp.lt.s32.totalorder %s476_s22, %s476_s22 }
  0x12   :  { %422 = vmatprep.subr.bf16.mxu0 %v421_v27  ;;  %v64_v43 = vld [vmem:[%s735_s1 + $0xf8] sm:$0xff]  ;;  %v431_v44 = vpack.c.bf16 %v46_v41, %v45_v40  ;;  %v47_v46 = vld [vmem:[%s735_s1 + $0x70] sm:$0xff]  ;;  %v29_v49 = vld [vmem:[%s734_s0] sm:$0xff] }
  0x13   :  { %v433_v45 = vpack.c.bf16 %v64_v43, %v63_v42  ;;  %v48_v47 = vld [vmem:[%s735_s1 + $0x78] sm:$0xff]  ;;  %v31_v51 = vld [vmem:[%s734_s0 + $0x10] sm:$0xff]  ;;  %v310_v54 = vld [vmem:[%s736_s2] ss:$0 sm:$0xff]  ;;  %p483_p3 = por %p482_p2, %p481_p1 }
  0x14   :  { %v435_v48 = vpack.c.bf16 %v48_v47, %v47_v46  ;;  %v32_v50 = vld [vmem:[%s734_s0 + $0x18] sm:$0xff]  ;;  %v190_v61 = vld [vmem:[%s739_s5] sm:$0xff]  ;;  %v191_v62 = vld [vmem:[%s739_s5 + $0x8] sm:$0xff] }
  0x15   :  { %424 = vmatpush3.bf16.msra.mxu0 %v423_v32  ;;  %v192_v63 = vld [vmem:[%s739_s5 + $0x10] sm:$0xff]  ;;  %v437_v0 = vpack.c.bf16 %v191_v62, %v190_v61  ;;  %v193_v1 = vld [vmem:[%s739_s5 + $0x18] sm:$0xff]  ;;  %v194_v11 = vld [vmem:[%s739_s5 + $0x20] sm:$0xff]  ;;  %p484_p4 = pnand %p483_p3, %p477_p0 }
  0x16   :  { %426 = vmatprep.subr.bf16.mxu0 %v425_v33  ;;  %v441_v2 = vpack.c.bf16 %v193_v1, %v192_v63  ;;  %v195_v12 = vld [vmem:[%s739_s5 + $0x28] sm:$0xff]  ;;  %v196_v14 = vld [vmem:[%s739_s5 + $0x30] sm:$0xff]  ;;  %v197_v15 = vld [vmem:[%s739_s5 + $0x38] sm:$0xff] }
  0x17   :  { %438 = vmatprep.subr.bf16.mxu1 %v437_v0  ;;  %v445_v13 = vpack.c.bf16 %v195_v12, %v194_v11  ;;  %v449_v16 = vpack.c.bf16 %v197_v15, %v196_v14  ;;  %v198_v17 = vld [vmem:[%s739_s5 + $0x40] sm:$0xff]  ;;  %v199_v18 = vld [vmem:[%s739_s5 + $0x48] sm:$0xff]  ;;  %v200_v20 = vld [vmem:[%s739_s5 + $0x50] sm:$0xff] }
  0x18   :  { %440 = vmatpush3.bf16.msra.mxu1 %v437_v0  ;;  %v453_v19 = vpack.c.bf16 %v199_v18, %v198_v17  ;;  %v201_v21 = vld [vmem:[%s739_s5 + $0x58] sm:$0xff]  ;;  %v202_v22 = vld [vmem:[%s739_s5 + $0x60] sm:$0xff]  ;;  %v203_v24 = vld [vmem:[%s739_s5 + $0x68] sm:$0xff] }
  0x19   :  { %428 = vmatpush3.bf16.msra.mxu0 %v427_v38  ;;  %442 = vmatprep.subr.bf16.mxu1 %v441_v2  ;;  %v457_v23 = vpack.c.bf16 %v201_v21, %v200_v20  ;;  %v461_v25 = vpack.c.bf16 %v203_v24, %v202_v22  ;;  %v204_v26 = vld [vmem:[%s739_s5 + $0x70] sm:$0xff]  ;;  %v205_v27 = vld [vmem:[%s739_s5 + $0x78] sm:$0xff]  ;;  %v311_v36 = vld [vmem:[%s737_s3] ss:$0 sm:$0xff] }
  0x1a   :  { %430 = vmatprep.subr.bf16.mxu0 %v429_v39  ;;  %v465_v28 = vpack.c.bf16 %v205_v27, %v204_v26  ;;  %v312_v38 = vld [vmem:[%s738_s4] ss:$0 sm:$0xff] }
  0x1c   :  { %444 = vmatpush3.bf16.msra.mxu1 %v441_v2 }
  0x1d   :  { %432 = vmatpush3.bf16.msra.mxu0 %v431_v44  ;;  %446 = vmatprep.subr.bf16.mxu1 %v445_v13 }
  0x1e   :  { %434 = vmatprep.subr.bf16.mxu0 %v433_v45 }
  0x20   :  { %448 = vmatpush3.bf16.msra.mxu1 %v445_v13 }
  0x21   :  { %436 = vmatpush3.bf16.msra.mxu0 %v435_v48  ;;  %450 = vmatprep.subr.bf16.mxu1 %v449_v16 }
  0x24   :  { %137 = vmatmul.mubr.f32.vlgmr.msra.gmra.mrb[0].mxu0 %v29_v49  ;;  %452 = vmatpush3.bf16.msra.mxu1 %v449_v16 }
  0x25   :  { %141 = vmatprep.mubr.f32.mxu0 %v32_v50  ;;  %454 = vmatprep.subr.bf16.mxu1 %v453_v19 }
  0x28   :  { %142 = vmatmul.mubr.f32.gmra.mrb[2].mxu0 %v31_v51  ;;  %456 = vmatpush3.bf16.msra.mxu1 %v453_v19 }
  0x29   :  { %458 = vmatprep.subr.bf16.mxu1 %v457_v23 }
  0x2c   :  { %460 = vmatpush3.bf16.msra.mxu1 %v457_v23 }
  0x2d   :  { %462 = vmatprep.subr.bf16.mxu1 %v461_v25 }
  0x30   :  { %464 = vmatpush3.bf16.msra.mxu1 %v461_v25 }
  0x31   :  { %466 = vmatprep.subr.bf16.mxu1 %v465_v28 }
  0x34   :  { %468 = vmatpush3.bf16.msra.mxu1 %v465_v28 }
  0xf7   :  { %v346_v52 = vpop.f32.mrb[0].mxu0 }
  0xf8   :  { %v347_v53 = vpop.f32.mrb[1].mxu0 }
  0xf9   :  { %v348_v55 = vadd.f32 %v347_v53, %v346_v52 }
  0xfb   :  { %v349_v56 = vpop.f32.mrb[2].mxu0  ;;  %v139_v57 = vadd.f32 %v348_v55, %v310_v54 }
  0xfc   :  { %v350_v58 = vpop.f32.mrb[3].mxu0 }
  0xfd   :  { %v351_v59 = vadd.f32 %v350_v58, %v349_v56  ;;  %147 = vadd.xlane.f32.xlu0 %v139_v57 }
  0xff   :  { %v144_v60 = vadd.f32 %v351_v59, %v310_v54 }
 0x101   :  { %149 = vadd.xlane.f32.xlu0 %v144_v60 }
 0x18a   :  { %v148_v3 = vpop.xlane.xlu0 %147 }
 0x18b   :  { %v152_v4 = vmul.f32 0.0078125, %v148_v3 }
 0x18d   :  { %v154_v5 = vsub.f32 %v139_v57, %v152_v4 }
 0x18e   :  { %v150_v6 = vpop.xlane.xlu0 %149 }
 0x18f   :  { %v153_v7 = vmul.f32 0.0078125, %v150_v6  ;;  %v156_v8 = vmul.f32 %v154_v5, %v154_v5 }
 0x191   :  { %v155_v9 = vsub.f32 %v144_v60, %v153_v7  ;;  %158 = vadd.xlane.f32.xlu1 %v156_v8 }
 0x193   :  { %v157_v10 = vmul.f32 %v155_v9, %v155_v9 }
 0x195   :  { %160 = vadd.xlane.f32.xlu1 %v157_v10 }
 0x21e   :  { %v159_v29 = vpop.xlane.xlu1 %158 }
 0x21f   :  { %v162_v30 = vmul.f32 0.0078125, %v159_v29 }
 0x221   :  { %v164_v31 = vadd.f32 1e-05, %v162_v30 }
 0x222   :  { %v161_v32 = vpop.xlane.xlu1 %160 }
 0x223   :  { %472 = vrsqrt.f32 %v164_v31  ;;  %v163_v33 = vmul.f32 0.0078125, %v161_v32 }
 0x225   :  { %v165_v34 = vadd.f32 1e-05, %v163_v33 }
 0x227   :  { %474 = vrsqrt.f32 %v165_v34 }
 0x22d   :  { %v473_v35 = vpop.eup %472 }
 0x22e   :  { %v168_v37 = vmul.f32 %v473_v35, %v154_v5 }
 0x230   :  { %v177_v39 = vmul.f32 %v311_v36, %v168_v37 }
 0x231   :  { %v475_v40 = vpop.eup %474 }
 0x232   :  { %v169_v41 = vmul.f32 %v475_v40, %v155_v9  ;;  %v186_v42 = vadd.f32 %v312_v38, %v177_v39 }
 0x234   :  { %v178_v43 = vmul.f32 %v311_v36, %v169_v41  ;;  %188 = vst [vmem:[#allocation2] sm:$0xff] %v186_v42  ;;  %402 = vmatprep.mubr.f32.mxu1 %v186_v42 }
 0x236   :  { %v187_v44 = vadd.f32 %v312_v38, %v178_v43 }
 0x238   :  { %189 = vst [vmem:[#allocation2 + $0x8] sm:$0xff] %v187_v44  ;;  %403 = vmatmul.mubr.f32.vlgmr.msra.gmra.mrb[0].mxu1 %v187_v44 }
 0x239   :  { %487 = shalt.err (!%p484_p4)
}
 0x23a   :  { %s488_s23 = scalar_lea.hbm %s742_s8, 256 }
 0x23b   :  { %p489_p5 = scmp.ne.s32.totalorder %s742_s8, %s488_s23  ;;  %p492_p6 = scmp.lt.u32.totalorder %s488_s23, %s742_s8 }
 0x23d   :  { %p494_p7 = pnand %p492_p6, %p489_p5 }
 0x23f   :  { %497 = shalt.err (!%p494_p7)
}
 0x240   :  { %s501_s28 = smov 128   ;;  %s502_s29 = smov 8   ;;  %v313_v45 = vld [vmem:[%s740_s6] ss:$0 sm:$0xff] }
 0x241   :  { %303 = dma.vmem_to_hbm [thread:$0]  %s298_s21, 256, %s742_s8, [#allocation3], %s501_s28, %s501_s28, %s502_s29  }
 0x30b   :  { %v404_v46 = vpop.f32.mrb[0].mxu1 }
 0x30c   :  { %v285_v47 = vadd.f32 %v404_v46, %v313_v45  ;;  %v279_v48 = vpop.f32.mrb[1].mxu1 }
 0x30d   :  { %v280_v49 = vadd.f32 %v313_v45, %v279_v48 }
 0x30e   :  { %289 = vst [vmem:[%s741_s7 + $0x8] sm:$0xff] %v285_v47 }
 0x30f   :  { %288 = vst [vmem:[%s741_s7] sm:$0xff] %v280_v49 }
 0x310   :  { %498 = dma.done.wait [#allocation3], 256  }
 0x311   :  { %499 = vsyncadd [#allocation3], 4294967040 }
 0x312   :  { %309 = vsyncpa [#allocation3], 1 }

</bundles_post_ra>
